<compile_context>
chip_gen: v7x
topology: tpu7x:2x2x1
jax: 0.10.0
libtpu: 0.0.40
codegen_flags: <defaults>
</compile_context>

<pallas_src>
import functools

import numpy as np
import jax
import jax.numpy as jnp
from jax import lax
from jax.experimental import pallas as pl
from jax.experimental.pallas import tpu as pltpu

LANE = 128  # TPU lane width: conv outputs are zero-padded to this for lane-dense stores


def _round_up(x, m):
    return (x + m - 1) // m * m


# ----------------------------------------------------------------------------
# Pallas kernels
# ----------------------------------------------------------------------------
def _matmul_relu_kernel(p_ref, w_ref, o_ref, *, relu):
    """One M-tile of patches_aug @ W_aug (bias folded in), optional fused ReLU.

    Output columns are zero-padded to 128 so every store is an unmasked,
    lane-dense vector store.
    """
    acc = jnp.dot(p_ref[...], w_ref[...], preferred_element_type=jnp.float32)
    if relu:
        acc = jnp.maximum(acc, 0.0)
    o_ref[...] = acc.astype(o_ref.dtype)


def _conv_upsample_kernel(p_ref, w_ref, k_ref, feat_ref, up_ref):
    """Fused conv2 matmul + batched bilinear (align_corners) upsample.

    acc rows are (n, h, w) with w fastest.  k_ref holds the block-diagonal
    kron(I_N, kron(Ah, Aw)) interpolation matrix, so the whole batch is
    upsampled with ONE MXU matmul against the in-VMEM conv accumulator --
    the conv2 result never round-trips through HBM before interpolation.
    """
    acc = jnp.dot(p_ref[...], w_ref[...], preferred_element_type=jnp.float32)
    feat_ref[...] = acc.astype(feat_ref.dtype)          # raw hooked conv2 output (pre-ReLU)
    up_ref[...] = jnp.dot(k_ref[...], acc,
                          preferred_element_type=jnp.float32).astype(up_ref.dtype)


# ----------------------------------------------------------------------------
# Host-side helpers
# ----------------------------------------------------------------------------
def _im2col(x_nhwc, kh, kw, stride, pad):
    """x_nhwc: (N, H, W, C) -> patches (N*Ho*Wo, kh*kw*C), column order (i, j, c)."""
    n, h, w, c = x_nhwc.shape
    xp = jnp.pad(x_nhwc, ((0, 0), (pad, pad), (pad, pad), (0, 0)))
    ho = (h + 2 * pad - kh) // stride + 1
    wo = (w + 2 * pad - kw) // stride + 1
    cols = []
    for i in range(kh):
        for j in range(kw):
            cols.append(xp[:, i:i + ho * stride:stride, j:j + wo * stride:stride, :])
    patches = jnp.concatenate(cols, axis=-1)            # (N, Ho, Wo, kh*kw*C)
    return patches.reshape(n * ho * wo, kh * kw * c), ho, wo


def _augment_bias_and_pad(patches, w_mat, bias, cout_pad):
    """Fold the bias into the matmul (ones column / bias row) and zero-pad Cout
    to `cout_pad` so the kernel's output stores are lane-dense."""
    m = patches.shape[0]
    p_aug = jnp.concatenate(
        [patches, jnp.ones((m, 1), patches.dtype)], axis=1).astype(jnp.float32)
    w_aug = jnp.concatenate(
        [w_mat, bias.reshape(1, -1)], axis=0).astype(jnp.float32)
    cout = w_aug.shape[1]
    if cout < cout_pad:
        w_aug = jnp.pad(w_aug, ((0, 0), (0, cout_pad - cout)))
    return p_aug, w_aug


def _interp_matrix(dst, src):
    """Bilinear interpolation matrix (numpy), align_corners=True semantics."""
    a = np.zeros((dst, src), dtype=np.float32)
    if dst == 1:
        a[0, 0] = 1.0
        return a
    scale = (src - 1) / (dst - 1)
    for t in range(dst):
        s = t * scale
        i0 = min(int(np.floor(s)), src - 1)
        i1 = min(i0 + 1, src - 1)
        w1 = s - i0
        a[t, i0] += 1.0 - w1
        a[t, i1] += w1
    return a


# ----------------------------------------------------------------------------
# Pallas wrappers
# ----------------------------------------------------------------------------
def conv2d_relu_pallas(x_nhwc, w_mat, bias, *, stride, pad, relu,
                       cout_pad=LANE, tm_max=256):
    """3x3 conv as im2col + fused (matmul + bias + optional ReLU) Pallas kernel.

    Whole-problem M tiles capped at tm_max (so v7x's 2 TensorCores can each
    take a tile when the problem is bigger); any M remainder is zero-padded
    and sliced off (no brittle divisibility assert).
    """
    # TODO(synk): for large inputs, move im2col inside the kernel (shifted
    # pl.ds loads from an NHWC block) to avoid materializing the 9x-expanded
    # patches array in HBM; at this toy size the XLA-side im2col is negligible.
    n = x_nhwc.shape[0]
    patches, ho, wo = _im2col(x_nhwc, 3, 3, stride, pad)
    p_aug, w_aug = _augment_bias_and_pad(patches, w_mat, bias, cout_pad)
    m, k = p_aug.shape
    tm = min(_round_up(m, 8), tm_max)
    m_pad = _round_up(m, tm)
    if m_pad != m:
        p_aug = jnp.pad(p_aug, ((0, m_pad - m), (0, 0)))
    out = pl.pallas_call(
        functools.partial(_matmul_relu_kernel, relu=relu),
        out_shape=jax.ShapeDtypeStruct((m_pad, cout_pad), jnp.float32),
        grid_spec=pltpu.PrefetchScalarGridSpec(
            num_scalar_prefetch=0,
            grid=(m_pad // tm,),
            in_specs=[pl.BlockSpec((tm, k), lambda i: (i, 0)),
                      pl.BlockSpec((k, cout_pad), lambda i: (0, 0))],
            out_specs=pl.BlockSpec((tm, cout_pad), lambda i: (i, 0))),
        compiler_params=pltpu.CompilerParams(dimension_semantics=("parallel",)),
    )(p_aug, w_aug)
    cout = w_mat.shape[1]
    return out[:m, :cout].reshape(n, ho, wo, cout)


def conv2d_upsample_pallas(x_nhwc, w_mat, bias, *, stride, pad, out_h, out_w,
                           cout_pad=LANE):
    """Fused: 3x3 conv (no ReLU) + bilinear align_corners upsample to (out_h, out_w).

    Returns (raw_conv_out_nhwc, upsampled_nhwc).  One pallas_call, grid=(1,):
    the conv accumulator stays in VMEM and feeds a single block-diagonal
    kron(I_N, kron(Ah, Aw)) matmul whose output is lane-dense (128 columns)."""
    n = x_nhwc.shape[0]
    patches, ho, wo = _im2col(x_nhwc, 3, 3, stride, pad)
    p_aug, w_aug = _augment_bias_and_pad(patches, w_mat, bias, cout_pad)
    m, k = p_aug.shape
    hw_src, hw_dst = ho * wo, out_h * out_w
    assert m == n * hw_src and (n * hw_src) % 8 == 0 and (n * hw_dst) % 8 == 0, (
        "fused conv+upsample kernel assumes 8-aligned spatial plane sizes")

    # kron(Ah, Aw): rows (H, W) W-fast, cols (h, w) w-fast -- matches the row
    # ordering (n, h, w) of the conv matmul output.  Block-diag over the batch
    # so the whole-batch upsample is ONE MXU matmul (one weight push).
    # TODO(synk): for large N / spatial sizes, switch to a per-image (or
    # separable Ah/Aw) formulation to keep the interpolation matrix small.
    ah = _interp_matrix(out_h, ho)
    aw = _interp_matrix(out_w, wo)
    kmat = np.kron(np.eye(n, dtype=np.float32), np.kron(ah, aw))
    kmat = jnp.asarray(kmat, dtype=jnp.float32)          # (n*hw_dst, n*hw_src)

    feat_pad, up_pad = pl.pallas_call(
        _conv_upsample_kernel,
        out_shape=(jax.ShapeDtypeStruct((m, cout_pad), jnp.float32),
                   jax.ShapeDtypeStruct((n * hw_dst, cout_pad), jnp.float32)),
        grid_spec=pltpu.PrefetchScalarGridSpec(
            num_scalar_prefetch=0,
            grid=(1,),
            in_specs=[pl.BlockSpec((m, k), lambda i: (0, 0)),
                      pl.BlockSpec((k, cout_pad), lambda i: (0, 0)),
                      pl.BlockSpec((n * hw_dst, n * hw_src), lambda i: (0, 0))],
            out_specs=[pl.BlockSpec((m, cout_pad), lambda i: (0, 0)),
                       pl.BlockSpec((n * hw_dst, cout_pad), lambda i: (0, 0))]),
        compiler_params=pltpu.CompilerParams(dimension_semantics=("arbitrary",)),
    )(p_aug, w_aug, kmat)

    cout = w_mat.shape[1]
    feat = feat_pad[:, :cout].reshape(n, ho, wo, cout)          # raw conv2, NHWC
    up = up_pad[:, :cout].reshape(n, out_h, out_w, cout)        # upsampled, NHWC
    return feat, up


# ----------------------------------------------------------------------------
# Synthetic submodule + HookFeat equivalent
# ----------------------------------------------------------------------------
class SyntheticCNN:
    """conv1(4->8, s1, p1) -> relu1 -> conv2(8->16, s2, p1) -> relu2."""

    def __init__(self, key):
        k1, k2, k3, k4 = jax.random.split(key, 4)
        # weights stored directly in matmul layout (kh*kw*Cin, Cout)
        self.w1 = jax.random.normal(k1, (3 * 3 * 4, 8), jnp.float32) * 0.1
        self.b1 = jax.random.normal(k2, (8,), jnp.float32) * 0.1
        self.w2 = jax.random.normal(k3, (3 * 3 * 8, 16), jnp.float32) * 0.1
        self.b2 = jax.random.normal(k4, (16,), jnp.float32) * 0.1

    def forward_with_hook(self, x_nchw, layername, upsample_size=None):
        """Run the net with a 'hook' on `layername`.

        Returns (hooked_input, hooked_output, hooked_output_upsampled_or_None),
        all NCHW."""
        if layername != "conv2":
            # TODO(synk): hook capture for layers other than "conv2" is not wired
            # up in this synthetic port (PyTorch HookFeat can hook any named layer).
            raise NotImplementedError(layername)

        x_nhwc = jnp.transpose(x_nchw, (0, 2, 3, 1))

        # conv1 + relu1 (ReLU fused into the Pallas matmul kernel)
        a1 = conv2d_relu_pallas(x_nhwc, self.w1, self.b1, stride=1, pad=1, relu=True)
        hooked_in = jnp.transpose(a1, (0, 3, 1, 2))      # the input the hook on conv2 sees

        if upsample_size is not None:
            a2, up = conv2d_upsample_pallas(
                a1, self.w2, self.b2, stride=2, pad=1,
                out_h=upsample_size[0], out_w=upsample_size[1])
            hooked_up = jnp.transpose(up, (0, 3, 1, 2))
        else:
            a2 = conv2d_relu_pallas(a1, self.w2, self.b2, stride=2, pad=1, relu=False)
            hooked_up = None
        hooked_out = jnp.transpose(a2, (0, 3, 1, 2))     # raw conv2 output (pre-relu2)
        # NOTE: the submodule would also apply relu2, but HookFeat discards the
        # submodule's return value, so it is not materialized here.
        return hooked_in, hooked_out, hooked_up


class HookFeatPallas:
    """Functional equivalent of utils/HookFeat.HookFeat for the synthetic CNN."""

    def __init__(self, submodule, layername, upscale=False):
        self.submodule = submodule
        self.layername = layername
        self.upscale = upscale
        self.inputs = None
        self.outputs = None
        self._fwd_cache = {}

    def _fwd(self, up_size):
        if up_size not in self._fwd_cache:
            self._fwd_cache[up_size] = jax.jit(
                functools.partial(self.submodule.forward_with_hook,
                                  layername=self.layername,
                                  upsample_size=up_size))
        return self._fwd_cache[up_size]

    def __call__(self, x_nchw):
        up_size = ((int(x_nchw.shape[2]), int(x_nchw.shape[3]))
                   if self.upscale else None)
        hooked_in, hooked_out, hooked_up = self._fwd(up_size)(x_nchw)
        self.inputs = (hooked_in,)          # PyTorch hook passes input as a tuple
        self.outputs = hooked_up if self.upscale else hooked_out
        return (self.inputs, self.outputs)


# ----------------------------------------------------------------------------
# Reference (pure JAX) for verification
# ----------------------------------------------------------------------------
def _ref_forward(net, x_nchw, out_h, out_w):
    x = jnp.transpose(x_nchw, (0, 2, 3, 1))
    w1 = net.w1.reshape(3, 3, 4, 8)   # HWIO, matches (i, j, c) patch order
    w2 = net.w2.reshape(3, 3, 8, 16)
    dn = ("NHWC", "HWIO", "NHWC")
    a1 = lax.conv_general_dilated(x, w1, (1, 1), [(1, 1), (1, 1)],
                                  dimension_numbers=dn) + net.b1
    a1 = jnp.maximum(a1, 0.0)
    a2 = lax.conv_general_dilated(a1, w2, (2, 2), [(1, 1), (1, 1)],
                                  dimension_numbers=dn) + net.b2
    feat = jnp.transpose(a2, (0, 3, 1, 2))                      # hooked output NCHW
    ah = jnp.asarray(_interp_matrix(out_h, feat.shape[2]))
    aw = jnp.asarray(_interp_matrix(out_w, feat.shape[3]))
    up = jnp.einsum("Hs,ncsw,Ww->ncHW", ah, feat, aw)
    return jnp.transpose(a1, (0, 3, 1, 2)), up


# ----------------------------------------------------------------------------
if __name__ == "__main__":
    key = jax.random.PRNGKey(0)
    k_net, k_x = jax.random.split(key)

    net = SyntheticCNN(k_net)
    hook = HookFeatPallas(net, layername="conv2", upscale=True)

    x = jax.random.normal(k_x, (2, 4, 16, 16), jnp.float32)     # NCHW like PyTorch

    (inputs, outputs) = hook(x)
    jax.block_until_ready(outputs)
    jax.block_until_ready(inputs[0])

    # sanity check vs pure-JAX reference
    ref_in, ref_out = _ref_forward(net, x, 16, 16)
    assert inputs[0].shape == (2, 8, 16, 16)
    assert outputs.shape == (2, 16, 16, 16)
    np.testing.assert_allclose(np.asarray(inputs[0]), np.asarray(ref_in),
                               rtol=1e-4, atol=1e-4)
    np.testing.assert_allclose(np.asarray(outputs), np.asarray(ref_out),
                               rtol=1e-4, atol=1e-4)

    print("KERNEL_OK")
</pallas_src>

<mosaic_0001>
module attributes {stable_mosaic.version = 11 : i64} {
  func.func @_matmul_relu_kernel(%arg0: i32, %arg1: memref<256x37xf32, #tpu.memory_space<vmem>>, %arg2: memref<37x128xf32, #tpu.memory_space<vmem>>, %arg3: memref<256x128xf32, #tpu.memory_space<vmem>>) attributes {dimension_semantics = [#tpu.dimension_semantics<parallel>], iteration_bounds = array<i64: 2>, scalar_prefetch = 0 : i64, scratch_operands = 0 : i64, tpu.core_type = #tpu.core_type<tc>, window_params = [{transform_indices = @transform_0, window_bounds = array<i64: 256, 37>}, {pipeline_mode = #tpu.pipeline_mode<synchronous>, transform_indices = @transform_1, window_bounds = array<i64: 37, 128>}, {transform_indices = @transform_2, window_bounds = array<i64: 256, 128>}]} {
    %c0 = arith.constant 0 : index
    %c0_0 = arith.constant 0 : index
    %0 = vector.load %arg1[%c0, %c0_0] : memref<256x37xf32, #tpu.memory_space<vmem>>, vector<256x37xf32>
    %c0_1 = arith.constant 0 : index
    %c0_2 = arith.constant 0 : index
    %1 = vector.load %arg2[%c0_1, %c0_2] : memref<37x128xf32, #tpu.memory_space<vmem>>, vector<37x128xf32>
    %cst = arith.constant dense<0.000000e+00> : vector<256x128xf32>
    %2 = tpu.matmul %0, %1, %cst {dimension_numbers = #tpu.dot_dimension_numbers<[1], [0], [0], [1], [0, 0, 1, 1], [], []>} : vector<256x37xf32>, vector<37x128xf32>, vector<256x128xf32> -> vector<256x128xf32>
    %cst_3 = arith.constant 0.000000e+00 : f32
    %3 = vector.broadcast %cst_3 : f32 to vector<256x128xf32>
    %4 = arith.maximumf %2, %3 : vector<256x128xf32>
    %c0_4 = arith.constant 0 : index
    %c0_5 = arith.constant 0 : index
    %5 = vector.load %arg3[%c0_4, %c0_5] : memref<256x128xf32, #tpu.memory_space<vmem>>, vector<256x128xf32>
    tpu.vector_store %arg3[%c0_4, %c0_5], %4 {strides = array<i32>} : memref<256x128xf32, #tpu.memory_space<vmem>>, vector<256x128xf32>,
    return
  }
  func.func @transform_0(%arg0: i32) -> (i32, i32) {
    %c0_i32 = arith.constant 0 : i32
    %c0_i32_0 = arith.constant 0 : i32
    return %arg0, %c0_i32 : i32, i32
  }
  func.func @transform_1(%arg0: i32) -> (i32, i32) {
    %c0_i32 = arith.constant 0 : i32
    %c0_i32_0 = arith.constant 0 : i32
    %c0_i32_1 = arith.constant 0 : i32
    return %c0_i32, %c0_i32_0 : i32, i32
  }
  func.func @transform_2(%arg0: i32) -> (i32, i32) {
    %c0_i32 = arith.constant 0 : i32
    %c0_i32_0 = arith.constant 0 : i32
    return %arg0, %c0_i32 : i32, i32
  }
}

module attributes {stable_mosaic.version = 11 : i64} {
  func.func @_conv_upsample_kernel(%arg0: i32, %arg1: memref<128x73xf32, #tpu.memory_space<vmem>>, %arg2: memref<73x128xf32, #tpu.memory_space<vmem>>, %arg3: memref<512x128xf32, #tpu.memory_space<vmem>>, %arg4: memref<128x128xf32, #tpu.memory_space<vmem>>, %arg5: memref<512x128xf32, #tpu.memory_space<vmem>>) attributes {dimension_semantics = [#tpu.dimension_semantics<arbitrary>], iteration_bounds = array<i64: 1>, scalar_prefetch = 0 : i64, scratch_operands = 0 : i64, tpu.core_type = #tpu.core_type<tc>, window_params = [{pipeline_mode = #tpu.pipeline_mode<synchronous>, transform_indices = @transform_0, window_bounds = array<i64: 128, 73>}, {pipeline_mode = #tpu.pipeline_mode<synchronous>, transform_indices = @transform_1, window_bounds = array<i64: 73, 128>}, {pipeline_mode = #tpu.pipeline_mode<synchronous>, transform_indices = @transform_2, window_bounds = array<i64: 512, 128>}, {pipeline_mode = #tpu.pipeline_mode<synchronous>, transform_indices = @transform_3, window_bounds = array<i64: 128, 128>}, {pipeline_mode = #tpu.pipeline_mode<synchronous>, transform_indices = @transform_4, window_bounds = array<i64: 512, 128>}]} {
    %c0 = arith.constant 0 : index
    %c0_0 = arith.constant 0 : index
    %0 = vector.load %arg1[%c0, %c0_0] : memref<128x73xf32, #tpu.memory_space<vmem>>, vector<128x73xf32>
    %c0_1 = arith.constant 0 : index
    %c0_2 = arith.constant 0 : index
    %1 = vector.load %arg2[%c0_1, %c0_2] : memref<73x128xf32, #tpu.memory_space<vmem>>, vector<73x128xf32>
    %cst = arith.constant dense<0.000000e+00> : vector<128x128xf32>
    %2 = tpu.matmul %0, %1, %cst {dimension_numbers = #tpu.dot_dimension_numbers<[1], [0], [0], [1], [0, 0, 1, 1], [], []>} : vector<128x73xf32>, vector<73x128xf32>, vector<128x128xf32> -> vector<128x128xf32>
    %c0_3 = arith.constant 0 : index
    %c0_4 = arith.constant 0 : index
    %3 = vector.load %arg4[%c0_3, %c0_4] : memref<128x128xf32, #tpu.memory_space<vmem>>, vector<128x128xf32>
    tpu.vector_store %arg4[%c0_3, %c0_4], %2 {strides = array<i32>} : memref<128x128xf32, #tpu.memory_space<vmem>>, vector<128x128xf32>,
    %c0_5 = arith.constant 0 : index
    %c0_6 = arith.constant 0 : index
    %4 = vector.load %arg3[%c0_5, %c0_6] : memref<512x128xf32, #tpu.memory_space<vmem>>, vector<512x128xf32>
    %cst_7 = arith.constant dense<0.000000e+00> : vector<512x128xf32>
    %5 = tpu.matmul %4, %2, %cst_7 {dimension_numbers = #tpu.dot_dimension_numbers<[1], [0], [0], [1], [0, 0, 1, 1], [], []>} : vector<512x128xf32>, vector<128x128xf32>, vector<512x128xf32> -> vector<512x128xf32>
    %c0_8 = arith.constant 0 : index
    %c0_9 = arith.constant 0 : index
    %6 = vector.load %arg5[%c0_8, %c0_9] : memref<512x128xf32, #tpu.memory_space<vmem>>, vector<512x128xf32>
    tpu.vector_store %arg5[%c0_8, %c0_9], %5 {strides = array<i32>} : memref<512x128xf32, #tpu.memory_space<vmem>>, vector<512x128xf32>,
    return
  }
  func.func @transform_0(%arg0: i32) -> (i32, i32) {
    %c0_i32 = arith.constant 0 : i32
    %c0_i32_0 = arith.constant 0 : i32
    %c0_i32_1 = arith.constant 0 : i32
    return %c0_i32, %c0_i32_0 : i32, i32
  }
  func.func @transform_1(%arg0: i32) -> (i32, i32) {
    %c0_i32 = arith.constant 0 : i32
    %c0_i32_0 = arith.constant 0 : i32
    %c0_i32_1 = arith.constant 0 : i32
    return %c0_i32, %c0_i32_0 : i32, i32
  }
  func.func @transform_2(%arg0: i32) -> (i32, i32) {
    %c0_i32 = arith.constant 0 : i32
    %c0_i32_0 = arith.constant 0 : i32
    %c0_i32_1 = arith.constant 0 : i32
    return %c0_i32, %c0_i32_0 : i32, i32
  }
  func.func @transform_3(%arg0: i32) -> (i32, i32) {
    %c0_i32 = arith.constant 0 : i32
    %c0_i32_0 = arith.constant 0 : i32
    %c0_i32_1 = arith.constant 0 : i32
    return %c0_i32, %c0_i32_0 : i32, i32
  }
  func.func @transform_4(%arg0: i32) -> (i32, i32) {
    %c0_i32 = arith.constant 0 : i32
    %c0_i32_0 = arith.constant 0 : i32
    %c0_i32_1 = arith.constant 0 : i32
    return %c0_i32, %c0_i32_0 : i32, i32
  }
}

</mosaic_0001>

<bundles_post_ra>
// kernel: forward_with_hook.2
= control target key start
LH: loop header
LB: loop body
LE: loop exit
PB: predicated region body
PF: predicated region fallthrough
CT: control target
= control target key end

     0   :  { %s814_s9 = smov 0   ;;  %s957_s0 = inlined_call_operand.vmem [shape: f32[512,37], index: 0, kind: input, shape index: {}]   ;;  %s958_s1 = inlined_call_operand.vmem [shape: f32[37,128], index: 1, kind: input, shape index: {}]   ;;  %s959_s2 = inlined_call_operand.vmem [shape: f32[512,128], index: 2, kind: output, shape index: {}]  }
   0x1 LB: > { %s630_s10 = sadd.s32 4294967295, %s797_s9   ;;  %p634_p0 = scmp.ge.s32.totalorder %s797_s9, 1  ;;  %s797_s9 = sphi %s814_s9, %s12_s9  }
   0x2   : > { %p113_p1 = scmp.lt.s32.totalorder %s797_s9, 3 }
   0x4   : > { %p114_p2 = pnand %p634_p0, %p113_p1 }
   0x5   : > { %v179_v0 = vld [vmem:[%s958_s1] sm:$0xff] (!%p114_p2)  ;;  %v180_v1 = vld [vmem:[%s958_s1 + $0x8] sm:$0xff] (!%p114_p2)  ;;  %v181_v2 = vld [vmem:[%s958_s1 + $0x10] sm:$0xff] (!%p114_p2)  ;;  %s635_s17 = sshll.u32 (!%p114_p2), %s630_s10, 5  ;;  %vm281_vm0 = vcmask (!%p114_p2), 1044480   ;;  %vm184_vm1 = vcmask (!%p114_p2), 302080  }
   0x6   : > { %117 = sbr.rel (%p114_p2) target bundleno = 263 (0x107), region = 28  ;;  %v769_v3 = vpack.c.bf16 (!%p114_p2), %v180_v1, %v179_v0  ;;  %v182_v4 = vld [vmem:[%s958_s1 + $0x18] sm:$0xff] (!%p114_p2)  ;;  %p136_p3 = scmp.lt.s32.totalorder (!%p114_p2), %s635_s17, 63  ;;  %v183_v6 = vld [vmem:[%s958_s1 + $0x20] sm:$0x1f] (!%p114_p2) }
   0x7   : > { %v773_v5 = vpack.c.bf16 (!%p114_p2), %v182_v4, %v181_v2 }
   0x8   : > { %770 = vmatprep.subr.bf16.mxu0 (!%p114_p2), %v769_v3  ;;  %777 = vmatprep.subr.bf16.mxu1 (!%p114_p2), %v769_v3 }
   0x9   : > { %772 = vmatpush3.bf16.msra.mxu0 (!%p114_p2), %v769_v3  ;;  %780 = vmatpush3.bf16.msra.mxu1 (!%p114_p2), %v769_v3 }
   0xa   : > { %774 = vmatprep.subr.bf16.mxu0 (!%p114_p2), %v773_v5  ;;  %778 = vmatprep.subr.bf16.mxu1 (!%p114_p2), %v773_v5 }
   0xd   : > { %s961_s17 = smov (!%p136_p3, %s635_s17), 63  ;;  %776 = vmatpush3.bf16.msra.mxu0 %v773_v5  ;;  %781 = vmatpush3.bf16.msra.mxu1 %v773_v5 }
   0xe   : > { %s636_s20 = sshll.u32 %s961_s17, 3  ;;  %719 = vmatprep.subr.msk.mxu0 %vm281_vm0, %v183_v6  ;;  %779 = vmatprep.subr.msk.mxu1 %vm281_vm0, %v183_v6 }
   0xf   : > { %s845_s25 = scalar_lea.vmem %s957_s0, %s636_s20  ;;  %s920_s28 = scalar_lea.vmem %s959_s2, %s636_s20 }
  0x10   : > { %v147_v7 = vld [vmem:[%s845_s25] sm:$0xff]  ;;  %v148_v9 = vld [vmem:[%s845_s25 + $0x8] sm:$0xff]  ;;  %v149_v11 = vld [vmem:[%s845_s25 + $0x10] sm:$0xff] }
  0x11   : > { %v163_v8 = vld [vmem:[%s845_s25 + $0x80] sm:$0xff]  ;;  %721 = vmatprep.mubr.msk.f32.mxu0 %vm184_vm1, %v147_v7  ;;  %v164_v10 = vld [vmem:[%s845_s25 + $0x88] sm:$0xff]  ;;  %v165_v12 = vld [vmem:[%s845_s25 + $0x90] sm:$0xff]  ;;  %720 = vmatpush3.msk.msra.mxu0 %vm281_vm0, %v183_v6 }
  0x12   : > { %745 = vmatprep.mubr.msk.f32.mxu1 %vm184_vm1, %v163_v8  ;;  %782 = vmatpush3.msk.msra.mxu1 %vm281_vm0, %v183_v6  ;;  %v150_v13 = vld [vmem:[%s845_s25 + $0x18] sm:$0xff]  ;;  %v151_v15 = vld [vmem:[%s845_s25 + $0x20] sm:$0xff]  ;;  %v152_v17 = vld [vmem:[%s845_s25 + $0x28] sm:$0xff] }
  0x13   : > { %722 = vmatmul.mubr.msk.f32.vlgmr.msra.gmra.mrb[0].mxu0 %vm184_vm1, %v148_v9  ;;  %746 = vmatmul.mubr.msk.f32.vlgmr.msra.gmra.mrb[0].mxu1 %vm184_vm1, %v164_v10  ;;  %v166_v14 = vld [vmem:[%s845_s25 + $0x98] sm:$0xff]  ;;  %v167_v16 = vld [vmem:[%s845_s25 + $0xa0] sm:$0xff]  ;;  %v168_v18 = vld [vmem:[%s845_s25 + $0xa8] sm:$0xff] }
  0x14   : > { %724 = vmatprep.mubr.msk.f32.mxu0 %vm184_vm1, %v149_v11  ;;  %748 = vmatprep.mubr.msk.f32.mxu1 %vm184_vm1, %v165_v12  ;;  %v153_v19 = vld [vmem:[%s845_s25 + $0x30] sm:$0xff]  ;;  %v154_v21 = vld [vmem:[%s845_s25 + $0x38] sm:$0xff]  ;;  %v155_v23 = vld [vmem:[%s845_s25 + $0x40] sm:$0xff] }
  0x15   : > { %v169_v20 = vld [vmem:[%s845_s25 + $0xb0] sm:$0xff]  ;;  %v170_v22 = vld [vmem:[%s845_s25 + $0xb8] sm:$0xff]  ;;  %v171_v24 = vld [vmem:[%s845_s25 + $0xc0] sm:$0xff] }
  0x16   : > { %v156_v25 = vld [vmem:[%s845_s25 + $0x48] sm:$0xff]  ;;  %v157_v27 = vld [vmem:[%s845_s25 + $0x50] sm:$0xff]  ;;  %v158_v29 = vld [vmem:[%s845_s25 + $0x58] sm:$0xff] }
  0x17   : > { %725 = vmatmul.mubr.msk.f32.gmra.mrb[2].mxu0 %vm184_vm1, %v150_v13  ;;  %749 = vmatmul.mubr.msk.f32.gmra.mrb[2].mxu1 %vm184_vm1, %v166_v14  ;;  %v172_v26 = vld [vmem:[%s845_s25 + $0xc8] sm:$0xff]  ;;  %v173_v28 = vld [vmem:[%s845_s25 + $0xd0] sm:$0xff]  ;;  %v174_v30 = vld [vmem:[%s845_s25 + $0xd8] sm:$0xff] }
  0x18   : > { %727 = vmatprep.mubr.msk.f32.mxu0 %vm184_vm1, %v151_v15  ;;  %751 = vmatprep.mubr.msk.f32.mxu1 %vm184_vm1, %v167_v16  ;;  %v159_v31 = vld [vmem:[%s845_s25 + $0x60] sm:$0xff]  ;;  %v160_v33 = vld [vmem:[%s845_s25 + $0x68] sm:$0xff]  ;;  %v161_v35 = vld [vmem:[%s845_s25 + $0x70] sm:$0xff] }
  0x19   : > { %v175_v32 = vld [vmem:[%s845_s25 + $0xe0] sm:$0xff]  ;;  %v176_v34 = vld [vmem:[%s845_s25 + $0xe8] sm:$0xff]  ;;  %v177_v36 = vld [vmem:[%s845_s25 + $0xf0] sm:$0xff] }
  0x1a   : > { %v162_v37 = vld [vmem:[%s845_s25 + $0x78] sm:$0xff] }
  0x1b   : > { %728 = vmatmul.mubr.msk.f32.gmra.mrb[4].mxu0 %vm184_vm1, %v152_v17  ;;  %752 = vmatmul.mubr.msk.f32.gmra.mrb[4].mxu1 %vm184_vm1, %v168_v18  ;;  %v178_v38 = vld [vmem:[%s845_s25 + $0xf8] sm:$0xff] }
  0x1c   : > { %730 = vmatprep.mubr.msk.f32.mxu0 %vm184_vm1, %v153_v19  ;;  %754 = vmatprep.mubr.msk.f32.mxu1 %vm184_vm1, %v169_v20 }
  0x1f   : > { %731 = vmatmul.mubr.msk.f32.gmra.mrb[6].mxu0 %vm184_vm1, %v154_v21  ;;  %755 = vmatmul.mubr.msk.f32.gmra.mrb[6].mxu1 %vm184_vm1, %v170_v22 }
  0x20   : > { %733 = vmatprep.mubr.msk.f32.mxu0 %vm184_vm1, %v155_v23  ;;  %757 = vmatprep.mubr.msk.f32.mxu1 %vm184_vm1, %v171_v24 }
  0x23   : > { %734 = vmatmul.mubr.msk.f32.gmra.mrb[8].mxu0 %vm184_vm1, %v156_v25  ;;  %758 = vmatmul.mubr.msk.f32.gmra.mrb[8].mxu1 %vm184_vm1, %v172_v26 }
  0x24   : > { %736 = vmatprep.mubr.msk.f32.mxu0 %vm184_vm1, %v157_v27  ;;  %760 = vmatprep.mubr.msk.f32.mxu1 %vm184_vm1, %v173_v28 }
  0x27   : > { %737 = vmatmul.mubr.msk.f32.gmra.mrb[10].mxu0 %vm184_vm1, %v158_v29  ;;  %761 = vmatmul.mubr.msk.f32.gmra.mrb[10].mxu1 %vm184_vm1, %v174_v30 }
  0x28   : > { %739 = vmatprep.mubr.msk.f32.mxu0 %vm184_vm1, %v159_v31  ;;  %763 = vmatprep.mubr.msk.f32.mxu1 %vm184_vm1, %v175_v32 }
  0x2b   : > { %740 = vmatmul.mubr.msk.f32.gmra.mrb[12].mxu0 %vm184_vm1, %v160_v33  ;;  %764 = vmatmul.mubr.msk.f32.gmra.mrb[12].mxu1 %vm184_vm1, %v176_v34 }
  0x2c   : > { %742 = vmatprep.mubr.msk.f32.mxu0 %vm184_vm1, %v161_v35  ;;  %766 = vmatprep.mubr.msk.f32.mxu1 %vm184_vm1, %v177_v36 }
  0x2f   : > { %743 = vmatmul.mubr.msk.f32.gmra.mrb[14].mxu0 %vm184_vm1, %v162_v37  ;;  %767 = vmatmul.mubr.msk.f32.gmra.mrb[14].mxu1 %vm184_vm1, %v178_v38 }
  0xe6   : > { %v723_v39 = vpop.f32.mrb[0].mxu0  ;;  %v747_v40 = vpop.f32.mrb[0].mxu1 }
  0xe7   : > { %v511_v41 = vmax.f32 %v723_v39, 0.0  ;;  %v527_v42 = vmax.f32 %v747_v40, 0.0  ;;  %v351_v43 = vpop.f32.mrb[1].mxu0  ;;  %v431_v44 = vpop.f32.mrb[1].mxu1 }
  0xe8   : > { %v510_v45 = vmax.f32 %v351_v43, 0.0  ;;  %v526_v46 = vmax.f32 %v431_v44, 0.0 }
  0xe9   : > { %543 = vst [vmem:[%s920_s28 + $0x8] sm:$0xff] %v511_v41  ;;  %559 = vst [vmem:[%s920_s28 + $0x88] sm:$0xff] %v527_v42 }
  0xea   : > { %542 = vst [vmem:[%s920_s28] sm:$0xff] %v510_v45  ;;  %558 = vst [vmem:[%s920_s28 + $0x80] sm:$0xff] %v526_v46  ;;  %v726_v47 = vpop.f32.mrb[2].mxu0  ;;  %v750_v48 = vpop.f32.mrb[2].mxu1 }
  0xeb   : > { %v513_v49 = vmax.f32 %v726_v47, 0.0  ;;  %v529_v50 = vmax.f32 %v750_v48, 0.0  ;;  %v361_v51 = vpop.f32.mrb[3].mxu0  ;;  %v441_v52 = vpop.f32.mrb[3].mxu1 }
  0xec   : > { %v512_v53 = vmax.f32 %v361_v51, 0.0  ;;  %v528_v54 = vmax.f32 %v441_v52, 0.0 }
  0xed   : > { %545 = vst [vmem:[%s920_s28 + $0x18] sm:$0xff] %v513_v49  ;;  %561 = vst [vmem:[%s920_s28 + $0x98] sm:$0xff] %v529_v50 }
  0xee   : > { %544 = vst [vmem:[%s920_s28 + $0x10] sm:$0xff] %v512_v53  ;;  %560 = vst [vmem:[%s920_s28 + $0x90] sm:$0xff] %v528_v54  ;;  %v729_v55 = vpop.f32.mrb[4].mxu0  ;;  %v753_v56 = vpop.f32.mrb[4].mxu1 }
  0xef   : > { %v515_v57 = vmax.f32 %v729_v55, 0.0  ;;  %v531_v58 = vmax.f32 %v753_v56, 0.0  ;;  %v371_v59 = vpop.f32.mrb[5].mxu0  ;;  %v451_v60 = vpop.f32.mrb[5].mxu1 }
  0xf0   : > { %v514_v61 = vmax.f32 %v371_v59, 0.0  ;;  %v530_v62 = vmax.f32 %v451_v60, 0.0 }
  0xf1   : > { %547 = vst [vmem:[%s920_s28 + $0x28] sm:$0xff] %v515_v57  ;;  %563 = vst [vmem:[%s920_s28 + $0xa8] sm:$0xff] %v531_v58 }
  0xf2   : > { %546 = vst [vmem:[%s920_s28 + $0x20] sm:$0xff] %v514_v61  ;;  %562 = vst [vmem:[%s920_s28 + $0xa0] sm:$0xff] %v530_v62  ;;  %v732_v63 = vpop.f32.mrb[6].mxu0  ;;  %v756_v0 = vpop.f32.mrb[6].mxu1 }
  0xf3   : > { %v517_v1 = vmax.f32 %v732_v63, 0.0  ;;  %v533_v2 = vmax.f32 %v756_v0, 0.0  ;;  %v381_v3 = vpop.f32.mrb[7].mxu0  ;;  %v461_v4 = vpop.f32.mrb[7].mxu1 }
  0xf4   : > { %v516_v5 = vmax.f32 %v381_v3, 0.0  ;;  %v532_v6 = vmax.f32 %v461_v4, 0.0 }
  0xf5   : > { %549 = vst [vmem:[%s920_s28 + $0x38] sm:$0xff] %v517_v1  ;;  %565 = vst [vmem:[%s920_s28 + $0xb8] sm:$0xff] %v533_v2 }
  0xf6   : > { %548 = vst [vmem:[%s920_s28 + $0x30] sm:$0xff] %v516_v5  ;;  %564 = vst [vmem:[%s920_s28 + $0xb0] sm:$0xff] %v532_v6  ;;  %v735_v7 = vpop.f32.mrb[8].mxu0  ;;  %v759_v8 = vpop.f32.mrb[8].mxu1 }
  0xf7   : > { %v519_v9 = vmax.f32 %v735_v7, 0.0  ;;  %v535_v10 = vmax.f32 %v759_v8, 0.0  ;;  %v391_v11 = vpop.f32.mrb[9].mxu0  ;;  %v471_v12 = vpop.f32.mrb[9].mxu1 }
  0xf8   : > { %v518_v13 = vmax.f32 %v391_v11, 0.0  ;;  %v534_v14 = vmax.f32 %v471_v12, 0.0 }
  0xf9   : > { %551 = vst [vmem:[%s920_s28 + $0x48] sm:$0xff] %v519_v9  ;;  %567 = vst [vmem:[%s920_s28 + $0xc8] sm:$0xff] %v535_v10 }
  0xfa   : > { %550 = vst [vmem:[%s920_s28 + $0x40] sm:$0xff] %v518_v13  ;;  %566 = vst [vmem:[%s920_s28 + $0xc0] sm:$0xff] %v534_v14  ;;  %v738_v15 = vpop.f32.mrb[10].mxu0  ;;  %v762_v16 = vpop.f32.mrb[10].mxu1 }
  0xfb   : > { %v521_v17 = vmax.f32 %v738_v15, 0.0  ;;  %v537_v18 = vmax.f32 %v762_v16, 0.0  ;;  %v401_v19 = vpop.f32.mrb[11].mxu0  ;;  %v481_v20 = vpop.f32.mrb[11].mxu1 }
  0xfc   : > { %v520_v21 = vmax.f32 %v401_v19, 0.0  ;;  %v536_v22 = vmax.f32 %v481_v20, 0.0 }
  0xfd   : > { %553 = vst [vmem:[%s920_s28 + $0x58] sm:$0xff] %v521_v17  ;;  %569 = vst [vmem:[%s920_s28 + $0xd8] sm:$0xff] %v537_v18 }
  0xfe   : > { %552 = vst [vmem:[%s920_s28 + $0x50] sm:$0xff] %v520_v21  ;;  %568 = vst [vmem:[%s920_s28 + $0xd0] sm:$0xff] %v536_v22  ;;  %v741_v23 = vpop.f32.mrb[12].mxu0  ;;  %v765_v24 = vpop.f32.mrb[12].mxu1 }
  0xff   : > { %v523_v25 = vmax.f32 %v741_v23, 0.0  ;;  %v539_v26 = vmax.f32 %v765_v24, 0.0  ;;  %v411_v27 = vpop.f32.mrb[13].mxu0  ;;  %v491_v28 = vpop.f32.mrb[13].mxu1 }
 0x100   : > { %v522_v29 = vmax.f32 %v411_v27, 0.0  ;;  %v538_v30 = vmax.f32 %v491_v28, 0.0 }
 0x101   : > { %555 = vst [vmem:[%s920_s28 + $0x68] sm:$0xff] %v523_v25  ;;  %571 = vst [vmem:[%s920_s28 + $0xe8] sm:$0xff] %v539_v26 }
 0x102   : > { %554 = vst [vmem:[%s920_s28 + $0x60] sm:$0xff] %v522_v29  ;;  %570 = vst [vmem:[%s920_s28 + $0xe0] sm:$0xff] %v538_v30  ;;  %v744_v31 = vpop.f32.mrb[14].mxu0  ;;  %v768_v32 = vpop.f32.mrb[14].mxu1 }
 0x103   : > { %v525_v33 = vmax.f32 %v744_v31, 0.0  ;;  %v541_v34 = vmax.f32 %v768_v32, 0.0  ;;  %v421_v35 = vpop.f32.mrb[15].mxu0  ;;  %v501_v36 = vpop.f32.mrb[15].mxu1 }
 0x104   : > { %v524_v37 = vmax.f32 %v421_v35, 0.0  ;;  %v540_v38 = vmax.f32 %v501_v36, 0.0 }
 0x105   : > { %557 = vst [vmem:[%s920_s28 + $0x78] sm:$0xff] %v525_v33  ;;  %573 = vst [vmem:[%s920_s28 + $0xf8] sm:$0xff] %v541_v34 }
 0x106   : > { %556 = vst [vmem:[%s920_s28 + $0x70] sm:$0xff] %v524_v37  ;;  %572 = vst [vmem:[%s920_s28 + $0xf0] sm:$0xff] %v540_v38 }
 0x107 PF: > { %s12_s9 = sadd.s32 1, %s797_s9  }
 0x108   : > { %p9_p4 = scmp.ge.s32.totalorder %s12_s9, 4  }
 0x10a   :  { %11 = sbr.rel (!%p9_p4) target bundleno = 1 (0x1), region = 58 }

// kernel: forward_with_hook.3
= control target key start
LH: loop header
LB: loop body
LE: loop exit
PB: predicated region body
PF: predicated region fallthrough
CT: control target
= control target key end

     0   :  { %vm43_vm0 = vcmask 596992   ;;  %s1702_s0 = inlined_call_operand.vmem [shape: f32[128,73], index: 0, kind: input, shape index: {}]   ;;  %s1703_s1 = inlined_call_operand.vmem [shape: f32[73,128], index: 1, kind: input, shape index: {}]   ;;  %s1704_s2 = inlined_call_operand.vmem [shape: f32[512,128], index: 2, kind: input, shape index: {}]   ;;  %s1705_s3 = inlined_call_operand.hbm [shape: f32[128,128], index: 3, kind: output, shape index: {0}]   ;;  %s1706_s4 = inlined_call_operand.vmem [shape: f32[512,128], index: 4, kind: output, shape index: {1}]  }
   0x1   :  { %v33_v0 = vld [vmem:[%s1703_s1] sm:$0xff]  ;;  %v34_v1 = vld [vmem:[%s1703_s1 + $0x8] sm:$0xff]  ;;  %v35_v2 = vld [vmem:[%s1703_s1 + $0x10] sm:$0xff] }
   0x2   :  { %v1085_v3 = vpack.c.bf16 %v34_v1, %v33_v0  ;;  %v36_v4 = vld [vmem:[%s1703_s1 + $0x18] sm:$0xff]  ;;  %v37_v6 = vld [vmem:[%s1703_s1 + $0x20] sm:$0xff]  ;;  %v38_v7 = vld [vmem:[%s1703_s1 + $0x28] sm:$0xff] }
   0x3   :  { %v1089_v5 = vpack.c.bf16 %v36_v4, %v35_v2  ;;  %v17_v8 = vld [vmem:[%s1702_s0] sm:$0xff]  ;;  %v1093_v9 = vpack.c.bf16 %v38_v7, %v37_v6  ;;  %v39_v10 = vld [vmem:[%s1703_s1 + $0x30] sm:$0xff]  ;;  %v40_v11 = vld [vmem:[%s1703_s1 + $0x38] sm:$0xff] }
   0x4   :  { %1086 = vmatprep.subr.bf16.mxu0 %v1085_v3  ;;  %933 = vmatprep.mubr.msk.f32.mxu0 %vm43_vm0, %v17_v8  ;;  %v1097_v12 = vpack.c.bf16 %v40_v11, %v39_v10 }
   0x5   :  { %1088 = vmatpush3.bf16.msra.mxu0 %v1085_v3 }
   0x6   :  { %1090 = vmatprep.subr.bf16.mxu0 %v1089_v5 }
   0x9   :  { %1092 = vmatpush3.bf16.msra.mxu0 %v1089_v5 }
   0xa   :  { %1094 = vmatprep.subr.bf16.mxu0 %v1093_v9 }
   0xb   :  { %10 = vsyncpa [#allocation3], 0  ;;  %v41_v13 = vld [vmem:[%s1703_s1 + $0x40] sm:$0xff]  ;;  %v42_v14 = vld [vmem:[%s1703_s1 + $0x48] sm:$0x1]  ;;  %vm92_vm1 = vcmask 1040384  }
   0xc   :  { %v1101_v15 = vpack.c.bf16 %v42_v14, %v41_v13  ;;  %vm1183_vm2 = vmmov 1   ;;  %v18_v16 = vld [vmem:[%s1702_s0 + $0x8] sm:$0xff]  ;;  %v19_v17 = vld [vmem:[%s1702_s0 + $0x10] sm:$0xff]  ;;  %v20_v18 = vld [vmem:[%s1702_s0 + $0x18] sm:$0xff]  ;;  %s1184_s28 = smov [#allocation2]  }
   0xd   :  { %1096 = vmatpush3.bf16.msra.mxu0 %v1093_v9  ;;  %vm1102_vm3 = vmpackc.low %vm92_vm1, %vm1183_vm2  ;;  %v21_v19 = vld [vmem:[%s1702_s0 + $0x20] sm:$0xff]  ;;  %v22_v20 = vld [vmem:[%s1702_s0 + $0x28] sm:$0xff]  ;;  %s775_s29 = sshll.u32 %s1184_s28, 4  ;;  %s776_s29 = int_to_ptr.vmem [resolvable:$true] %s775_s29 }
   0xe   :  { %1098 = vmatprep.subr.bf16.mxu0 %v1097_v12  ;;  %v23_v21 = vld [vmem:[%s1702_s0 + $0x30] sm:$0xff]  ;;  %v24_v22 = vld [vmem:[%s1702_s0 + $0x38] sm:$0xff]  ;;  %v25_v23 = vld [vmem:[%s1702_s0 + $0x40] sm:$0xff]  ;;  %s1159_s30 = scalar_lea.vmem %s776_s29, 2048  ;;  %p1164_p1 = scmp.lt.s32.totalorder %s776_s29, %s776_s29 }
   0xf   :  { %v26_v24 = vld [vmem:[%s1702_s0 + $0x48] sm:$0xff]  ;;  %v27_v25 = vld [vmem:[%s1702_s0 + $0x50] sm:$0xff]  ;;  %v28_v26 = vld [vmem:[%s1702_s0 + $0x58] sm:$0xff]  ;;  %p1160_p0 = scmp.ne.s32.totalorder %s776_s29, %s1159_s30  ;;  %p1165_p2 = scmp.lt.s32.totalorder %s1159_s30, %s1159_s30 }
  0x10   :  { %v29_v27 = vld [vmem:[%s1702_s0 + $0x60] sm:$0xff]  ;;  %v30_v28 = vld [vmem:[%s1702_s0 + $0x68] sm:$0xff]  ;;  %v31_v29 = vld [vmem:[%s1702_s0 + $0x70] sm:$0xff] }
  0x11   :  { %1100 = vmatpush3.bf16.msra.mxu0 %v1097_v12  ;;  %v32_v30 = vld [vmem:[%s1702_s0 + $0x78] sm:$0xff]  ;;  %v283_v31 = vld [vmem:[%s1704_s2 + $0xd0] sm:$0xff]  ;;  %v257_v32 = vld [vmem:[%s1704_s2] sm:$0xff]  ;;  %p1166_p3 = por %p1165_p2, %p1164_p1 }
  0x12   :  { %1103 = vmatprep.subr.msk.bf16.mxu0 %vm1102_vm3, %v1101_v15  ;;  %1028 = vmatprep.mubr.f32.mxu1 %v283_v31  ;;  %v284_v57 = vld [vmem:[%s1704_s2 + $0xd8] sm:$0xff]  ;;  %v258_v58 = vld [vmem:[%s1704_s2 + $0x8] sm:$0xff]  ;;  %v285_v59 = vld [vmem:[%s1704_s2 + $0xe0] sm:$0xff] }
  0x13   :  { %v259_v60 = vld [vmem:[%s1704_s2 + $0x10] sm:$0xff]  ;;  %v286_v61 = vld [vmem:[%s1704_s2 + $0xe8] sm:$0xff]  ;;  %v260_v62 = vld [vmem:[%s1704_s2 + $0x18] sm:$0xff]  ;;  %p1167_p4 = pnand %p1166_p3, %p1160_p0 }
  0x14   :  { %v287_v63 = vld [vmem:[%s1704_s2 + $0xf0] sm:$0xff]  ;;  %v261_v0 = vld [vmem:[%s1704_s2 + $0x20] sm:$0xff]  ;;  %v288_v1 = vld [vmem:[%s1704_s2 + $0xf8] sm:$0xff] }
  0x15   :  { %1106 = vmatpush3.bf16.msk.msra.mxu0 %vm1102_vm3, %v1101_v15  ;;  %v262_v2 = vld [vmem:[%s1704_s2 + $0x28] sm:$0xff]  ;;  %v289_v3 = vld [vmem:[%s1704_s2 + $0x100] sm:$0xff]  ;;  %v263_v4 = vld [vmem:[%s1704_s2 + $0x30] sm:$0xff] }
  0x16   :  { %v290_v5 = vld [vmem:[%s1704_s2 + $0x108] sm:$0xff]  ;;  %v264_v6 = vld [vmem:[%s1704_s2 + $0x38] sm:$0xff]  ;;  %v291_v7 = vld [vmem:[%s1704_s2 + $0x110] sm:$0xff] }
  0x17   :  { %v265_v8 = vld [vmem:[%s1704_s2 + $0x40] sm:$0xff]  ;;  %v292_v9 = vld [vmem:[%s1704_s2 + $0x118] sm:$0xff]  ;;  %v266_v10 = vld [vmem:[%s1704_s2 + $0x48] sm:$0xff] }
  0x18   :  { %934 = vmatmul.mubr.msk.f32.vlgmr.msra.gmra.mrb[0].mxu0 %vm43_vm0, %v18_v16  ;;  %v293_v11 = vld [vmem:[%s1704_s2 + $0x120] sm:$0xff]  ;;  %v267_v12 = vld [vmem:[%s1704_s2 + $0x50] sm:$0xff]  ;;  %v294_v13 = vld [vmem:[%s1704_s2 + $0x128] sm:$0xff] }
  0x19   :  { %936 = vmatprep.mubr.msk.f32.mxu0 %vm43_vm0, %v19_v17  ;;  %v268_v14 = vld [vmem:[%s1704_s2 + $0x58] sm:$0xff]  ;;  %v295_v15 = vld [vmem:[%s1704_s2 + $0x130] sm:$0xff]  ;;  %v269_v16 = vld [vmem:[%s1704_s2 + $0x60] sm:$0xff] }
  0x1a   :  { %v296_v17 = vld [vmem:[%s1704_s2 + $0x138] sm:$0xff]  ;;  %v303_v31 = vld [vmem:[%s1704_s2 + $0x170] sm:$0xff] }
  0x1c   :  { %937 = vmatmul.mubr.msk.f32.gmra.mrb[2].mxu0 %vm43_vm0, %v20_v18  ;;  %v270_v18 = vld [vmem:[%s1704_s2 + $0x68] sm:$0xff] }
  0x1d   :  { %939 = vmatprep.mubr.msk.f32.mxu0 %vm43_vm0, %v21_v19  ;;  %v297_v19 = vld [vmem:[%s1704_s2 + $0x140] sm:$0xff] }
  0x20   :  { %940 = vmatmul.mubr.msk.f32.gmra.mrb[4].mxu0 %vm43_vm0, %v22_v20  ;;  %v271_v20 = vld [vmem:[%s1704_s2 + $0x70] sm:$0xff] }
  0x21   :  { %942 = vmatprep.mubr.msk.f32.mxu0 %vm43_vm0, %v23_v21  ;;  %v298_v21 = vld [vmem:[%s1704_s2 + $0x148] sm:$0xff] }
  0x24   :  { %943 = vmatmul.mubr.msk.f32.gmra.mrb[6].mxu0 %vm43_vm0, %v24_v22  ;;  %v272_v22 = vld [vmem:[%s1704_s2 + $0x78] sm:$0xff] }
  0x25   :  { %945 = vmatprep.mubr.msk.f32.mxu0 %vm43_vm0, %v25_v23  ;;  %v299_v23 = vld [vmem:[%s1704_s2 + $0x150] sm:$0xff] }
  0x28   :  { %946 = vmatmul.mubr.msk.f32.gmra.mrb[8].mxu0 %vm43_vm0, %v26_v24  ;;  %v273_v24 = vld [vmem:[%s1704_s2 + $0x80] sm:$0xff] }
  0x29   :  { %948 = vmatprep.mubr.msk.f32.mxu0 %vm43_vm0, %v27_v25  ;;  %v300_v25 = vld [vmem:[%s1704_s2 + $0x158] sm:$0xff] }
  0x2c   :  { %949 = vmatmul.mubr.msk.f32.gmra.mrb[10].mxu0 %vm43_vm0, %v28_v26  ;;  %v274_v26 = vld [vmem:[%s1704_s2 + $0x88] sm:$0xff] }
  0x2d   :  { %951 = vmatprep.mubr.msk.f32.mxu0 %vm43_vm0, %v29_v27  ;;  %v301_v27 = vld [vmem:[%s1704_s2 + $0x160] sm:$0xff] }
  0x30   :  { %952 = vmatmul.mubr.msk.f32.gmra.mrb[12].mxu0 %vm43_vm0, %v30_v28  ;;  %v275_v28 = vld [vmem:[%s1704_s2 + $0x90] sm:$0xff] }
  0x31   :  { %954 = vmatprep.mubr.msk.f32.mxu0 %vm43_vm0, %v31_v29  ;;  %v302_v29 = vld [vmem:[%s1704_s2 + $0x168] sm:$0xff] }
  0x34   :  { %955 = vmatmul.mubr.msk.f32.gmra.mrb[14].mxu0 %vm43_vm0, %v32_v30  ;;  %v276_v30 = vld [vmem:[%s1704_s2 + $0x98] sm:$0xff] }
  0x35   :  { %989 = vmatprep.mubr.f32.mxu0 %v257_v32  ;;  %v277_v32 = vld [vmem:[%s1704_s2 + $0xa0] sm:$0xff] }
  0xeb   :  { %v935_v33 = vpop.f32.mrb[0].mxu0 }
  0xec   :  { %242 = vst [vmem:[#allocation2 + $0x8] sm:$0xff] %v935_v33  ;;  %v162_v34 = vpop.f32.mrb[1].mxu0 }
  0xed   :  { %241 = vst [vmem:[#allocation2] sm:$0xff] %v162_v34  ;;  %v1107_v35 = vpack.c.bf16 %v935_v33, %v162_v34  ;;  %v304_v33 = vld [vmem:[%s1704_s2 + $0x178] sm:$0xff]  ;;  %v278_v34 = vld [vmem:[%s1704_s2 + $0xa8] sm:$0xff] }
  0xef   :  { %v938_v36 = vpop.f32.mrb[2].mxu0  ;;  %1108 = vmatprep.subr.bf16.mxu0 %v1107_v35  ;;  %1139 = vmatprep.subr.bf16.mxu1 %v1107_v35 }
  0xf0   :  { %244 = vst [vmem:[#allocation2 + $0x18] sm:$0xff] %v938_v36  ;;  %v172_v37 = vpop.f32.mrb[3].mxu0  ;;  %1110 = vmatpush3.bf16.msra.mxu0 %v1107_v35  ;;  %1147 = vmatpush3.bf16.msra.mxu1 %v1107_v35  ;;  %v305_v35 = vld [vmem:[%s1704_s2 + $0x180] sm:$0xff] }
  0xf1   :  { %243 = vst [vmem:[#allocation2 + $0x10] sm:$0xff] %v172_v37  ;;  %v1111_v38 = vpack.c.bf16 %v938_v36, %v172_v37  ;;  %v279_v36 = vld [vmem:[%s1704_s2 + $0xb0] sm:$0xff]  ;;  %v306_v37 = vld [vmem:[%s1704_s2 + $0x188] sm:$0xff] }
  0xf3   :  { %v941_v39 = vpop.f32.mrb[4].mxu0  ;;  %1112 = vmatprep.subr.bf16.mxu0 %v1111_v38  ;;  %1140 = vmatprep.subr.bf16.mxu1 %v1111_v38 }
  0xf4   :  { %246 = vst [vmem:[#allocation2 + $0x28] sm:$0xff] %v941_v39  ;;  %v182_v40 = vpop.f32.mrb[5].mxu0  ;;  %1114 = vmatpush3.bf16.msra.mxu0 %v1111_v38  ;;  %1148 = vmatpush3.bf16.msra.mxu1 %v1111_v38  ;;  %v280_v38 = vld [vmem:[%s1704_s2 + $0xb8] sm:$0xff] }
  0xf5   :  { %245 = vst [vmem:[#allocation2 + $0x20] sm:$0xff] %v182_v40  ;;  %v1115_v41 = vpack.c.bf16 %v941_v39, %v182_v40  ;;  %v307_v39 = vld [vmem:[%s1704_s2 + $0x190] sm:$0xff]  ;;  %v281_v40 = vld [vmem:[%s1704_s2 + $0xc0] sm:$0xff] }
  0xf7   :  { %v944_v42 = vpop.f32.mrb[6].mxu0  ;;  %1116 = vmatprep.subr.bf16.mxu0 %v1115_v41  ;;  %1141 = vmatprep.subr.bf16.mxu1 %v1115_v41 }
  0xf8   :  { %248 = vst [vmem:[#allocation2 + $0x38] sm:$0xff] %v944_v42  ;;  %v192_v43 = vpop.f32.mrb[7].mxu0  ;;  %1118 = vmatpush3.bf16.msra.mxu0 %v1115_v41  ;;  %1149 = vmatpush3.bf16.msra.mxu1 %v1115_v41  ;;  %v308_v41 = vld [vmem:[%s1704_s2 + $0x198] sm:$0xff] }
  0xf9   :  { %247 = vst [vmem:[#allocation2 + $0x30] sm:$0xff] %v192_v43  ;;  %v1119_v44 = vpack.c.bf16 %v944_v42, %v192_v43  ;;  %v282_v42 = vld [vmem:[%s1704_s2 + $0xc8] sm:$0xff]  ;;  %v309_v43 = vld [vmem:[%s1704_s2 + $0x1a0] sm:$0xff] }
  0xfb   :  { %v947_v45 = vpop.f32.mrb[8].mxu0  ;;  %1120 = vmatprep.subr.bf16.mxu0 %v1119_v44  ;;  %1142 = vmatprep.subr.bf16.mxu1 %v1119_v44 }
  0xfc   :  { %250 = vst [vmem:[#allocation2 + $0x48] sm:$0xff] %v947_v45  ;;  %v202_v46 = vpop.f32.mrb[9].mxu0  ;;  %1122 = vmatpush3.bf16.msra.mxu0 %v1119_v44  ;;  %1150 = vmatpush3.bf16.msra.mxu1 %v1119_v44  ;;  %v310_v44 = vld [vmem:[%s1704_s2 + $0x1a8] sm:$0xff] }
  0xfd   :  { %249 = vst [vmem:[#allocation2 + $0x40] sm:$0xff] %v202_v46  ;;  %v1123_v47 = vpack.c.bf16 %v947_v45, %v202_v46  ;;  %v311_v45 = vld [vmem:[%s1704_s2 + $0x1b0] sm:$0xff]  ;;  %v312_v46 = vld [vmem:[%s1704_s2 + $0x1b8] sm:$0xff] }
  0xff   :  { %v950_v48 = vpop.f32.mrb[10].mxu0  ;;  %1124 = vmatprep.subr.bf16.mxu0 %v1123_v47  ;;  %1143 = vmatprep.subr.bf16.mxu1 %v1123_v47 }
 0x100   :  { %252 = vst [vmem:[#allocation2 + $0x58] sm:$0xff] %v950_v48  ;;  %v212_v49 = vpop.f32.mrb[11].mxu0  ;;  %1126 = vmatpush3.bf16.msra.mxu0 %v1123_v47  ;;  %1151 = vmatpush3.bf16.msra.mxu1 %v1123_v47  ;;  %v313_v47 = vld [vmem:[%s1704_s2 + $0x1c0] sm:$0xff] }
 0x101   :  { %251 = vst [vmem:[#allocation2 + $0x50] sm:$0xff] %v212_v49  ;;  %v1127_v50 = vpack.c.bf16 %v950_v48, %v212_v49  ;;  %v314_v48 = vld [vmem:[%s1704_s2 + $0x1c8] sm:$0xff]  ;;  %v315_v49 = vld [vmem:[%s1704_s2 + $0x1d0] sm:$0xff] }
 0x103   :  { %v953_v51 = vpop.f32.mrb[12].mxu0  ;;  %1128 = vmatprep.subr.bf16.mxu0 %v1127_v50  ;;  %1144 = vmatprep.subr.bf16.mxu1 %v1127_v50 }
 0x104   :  { %254 = vst [vmem:[#allocation2 + $0x68] sm:$0xff] %v953_v51  ;;  %v222_v52 = vpop.f32.mrb[13].mxu0  ;;  %1130 = vmatpush3.bf16.msra.mxu0 %v1127_v50  ;;  %1152 = vmatpush3.bf16.msra.mxu1 %v1127_v50  ;;  %v316_v50 = vld [vmem:[%s1704_s2 + $0x1d8] sm:$0xff] }
 0x105   :  { %253 = vst [vmem:[#allocation2 + $0x60] sm:$0xff] %v222_v52  ;;  %v1131_v53 = vpack.c.bf16 %v953_v51, %v222_v52  ;;  %v317_v51 = vld [vmem:[%s1704_s2 + $0x1e0] sm:$0xff]  ;;  %v318_v52 = vld [vmem:[%s1704_s2 + $0x1e8] sm:$0xff] }
 0x107   :  { %v956_v54 = vpop.f32.mrb[14].mxu0  ;;  %1132 = vmatprep.subr.bf16.mxu0 %v1131_v53  ;;  %1145 = vmatprep.subr.bf16.mxu1 %v1131_v53 }
 0x108   :  { %256 = vst [vmem:[#allocation2 + $0x78] sm:$0xff] %v956_v54  ;;  %v232_v55 = vpop.f32.mrb[15].mxu0  ;;  %1134 = vmatpush3.bf16.msra.mxu0 %v1131_v53  ;;  %1153 = vmatpush3.bf16.msra.mxu1 %v1131_v53  ;;  %v319_v53 = vld [vmem:[%s1704_s2 + $0x1f0] sm:$0xff] }
 0x109   :  { %255 = vst [vmem:[#allocation2 + $0x70] sm:$0xff] %v232_v55  ;;  %v1135_v56 = vpack.c.bf16 %v956_v54, %v232_v55  ;;  %v320_v54 = vld [vmem:[%s1704_s2 + $0x1f8] sm:$0xff] }
 0x10b   :  { %1136 = vmatprep.subr.bf16.mxu0 %v1135_v56  ;;  %1146 = vmatprep.subr.bf16.mxu1 %v1135_v56 }
 0x10c   :  { %1138 = vmatpush3.bf16.msra.mxu0 %v1135_v56  ;;  %1154 = vmatpush3.bf16.msra.mxu1 %v1135_v56 }
 0x10f   :  { %1029 = vmatmul.mubr.f32.vlgmr.msra.gmra.mrb[0].mxu1 %v284_v57  ;;  %990 = vmatmul.mubr.f32.vlgmr.msra.gmra.mrb[16].mxu0 %v258_v58 }
 0x110   :  { %1031 = vmatprep.mubr.f32.mxu1 %v285_v59  ;;  %992 = vmatprep.mubr.f32.mxu0 %v259_v60 }
 0x113   :  { %1032 = vmatmul.mubr.f32.gmra.mrb[2].mxu1 %v286_v61  ;;  %993 = vmatmul.mubr.f32.gmra.mrb[18].mxu0 %v260_v62 }
 0x114   :  { %1034 = vmatprep.mubr.f32.mxu1 %v287_v63  ;;  %995 = vmatprep.mubr.f32.mxu0 %v261_v0 }
 0x117   :  { %1035 = vmatmul.mubr.f32.gmra.mrb[4].mxu1 %v288_v1  ;;  %996 = vmatmul.mubr.f32.gmra.mrb[20].mxu0 %v262_v2 }
 0x118   :  { %1037 = vmatprep.mubr.f32.mxu1 %v289_v3  ;;  %998 = vmatprep.mubr.f32.mxu0 %v263_v4 }
 0x11b   :  { %1038 = vmatmul.mubr.f32.gmra.mrb[6].mxu1 %v290_v5  ;;  %999 = vmatmul.mubr.f32.gmra.mrb[22].mxu0 %v264_v6 }
 0x11c   :  { %1040 = vmatprep.mubr.f32.mxu1 %v291_v7  ;;  %1001 = vmatprep.mubr.f32.mxu0 %v265_v8 }
 0x11f   :  { %1041 = vmatmul.mubr.f32.gmra.mrb[8].mxu1 %v292_v9  ;;  %1002 = vmatmul.mubr.f32.gmra.mrb[24].mxu0 %v266_v10 }
 0x120   :  { %1043 = vmatprep.mubr.f32.mxu1 %v293_v11  ;;  %1004 = vmatprep.mubr.f32.mxu0 %v267_v12 }
 0x123   :  { %1044 = vmatmul.mubr.f32.gmra.mrb[10].mxu1 %v294_v13  ;;  %1005 = vmatmul.mubr.f32.gmra.mrb[26].mxu0 %v268_v14 }
 0x124   :  { %1046 = vmatprep.mubr.f32.mxu1 %v295_v15  ;;  %1007 = vmatprep.mubr.f32.mxu0 %v269_v16 }
 0x127   :  { %1047 = vmatmul.mubr.f32.gmra.mrb[12].mxu1 %v296_v17  ;;  %1008 = vmatmul.mubr.f32.gmra.mrb[28].mxu0 %v270_v18 }
 0x128   :  { %1049 = vmatprep.mubr.f32.mxu1 %v297_v19  ;;  %1010 = vmatprep.mubr.f32.mxu0 %v271_v20 }
 0x12b   :  { %1050 = vmatmul.mubr.f32.gmra.mrb[14].mxu1 %v298_v21  ;;  %1011 = vmatmul.mubr.f32.gmra.mrb[30].mxu0 %v272_v22 }
 0x12c   :  { %1052 = vmatprep.mubr.f32.mxu1 %v299_v23  ;;  %1013 = vmatprep.mubr.f32.mxu0 %v273_v24 }
 0x12f   :  { %1053 = vmatmul.mubr.f32.gmra.mrb[16].mxu1 %v300_v25  ;;  %1014 = vmatmul.mubr.f32.gmra.mrb[32].mxu0 %v274_v26 }
 0x130   :  { %1055 = vmatprep.mubr.f32.mxu1 %v301_v27  ;;  %1016 = vmatprep.mubr.f32.mxu0 %v275_v28 }
 0x133   :  { %1056 = vmatmul.mubr.f32.gmra.mrb[18].mxu1 %v302_v29  ;;  %1017 = vmatmul.mubr.f32.gmra.mrb[34].mxu0 %v276_v30 }
 0x134   :  { %1058 = vmatprep.mubr.f32.mxu1 %v303_v31  ;;  %1019 = vmatprep.mubr.f32.mxu0 %v277_v32 }
 0x137   :  { %1059 = vmatmul.mubr.f32.gmra.mrb[20].mxu1 %v304_v33  ;;  %1020 = vmatmul.mubr.f32.gmra.mrb[36].mxu0 %v278_v34 }
 0x138   :  { %1061 = vmatprep.mubr.f32.mxu1 %v305_v35  ;;  %1022 = vmatprep.mubr.f32.mxu0 %v279_v36 }
 0x13b   :  { %1062 = vmatmul.mubr.f32.gmra.mrb[22].mxu1 %v306_v37  ;;  %1023 = vmatmul.mubr.f32.gmra.mrb[38].mxu0 %v280_v38 }
 0x13c   :  { %1064 = vmatprep.mubr.f32.mxu1 %v307_v39  ;;  %1025 = vmatprep.mubr.f32.mxu0 %v281_v40 }
 0x13f   :  { %1065 = vmatmul.mubr.f32.gmra.mrb[24].mxu1 %v308_v41  ;;  %1026 = vmatmul.mubr.f32.gmra.mrb[40].mxu0 %v282_v42 }
 0x140   :  { %1067 = vmatprep.mubr.f32.mxu1 %v309_v43 }
 0x143   :  { %1068 = vmatmul.mubr.f32.gmra.mrb[26].mxu1 %v310_v44 }
 0x144   :  { %1070 = vmatprep.mubr.f32.mxu1 %v311_v45 }
 0x147   :  { %1071 = vmatmul.mubr.f32.gmra.mrb[28].mxu1 %v312_v46 }
 0x148   :  { %1073 = vmatprep.mubr.f32.mxu1 %v313_v47 }
 0x14b   :  { %1074 = vmatmul.mubr.f32.gmra.mrb[30].mxu1 %v314_v48 }
 0x14c   :  { %1076 = vmatprep.mubr.f32.mxu1 %v315_v49 }
 0x14f   :  { %1077 = vmatmul.mubr.f32.gmra.mrb[32].mxu1 %v316_v50 }
 0x150   :  { %1079 = vmatprep.mubr.f32.mxu1 %v317_v51 }
 0x153   :  { %1080 = vmatmul.mubr.f32.gmra.mrb[34].mxu1 %v318_v52 }
 0x154   :  { %1082 = vmatprep.mubr.f32.mxu1 %v319_v53 }
 0x157   :  { %1083 = vmatmul.mubr.f32.gmra.mrb[36].mxu1 %v320_v54 }
 0x158   :  { %1170 = shalt.err (!%p1167_p4)
}
 0x159   :  { %s1171_s7 = scalar_lea.hbm %s1705_s3, 2048 }
 0x15a   :  { %p1172_p5 = scmp.ne.s32.totalorder %s1705_s3, %s1171_s7  ;;  %p1175_p6 = scmp.lt.u32.totalorder %s1171_s7, %s1705_s3 }
 0x15c   :  { %p1177_p7 = pnand %p1175_p6, %p1172_p5 }
 0x15e   :  { %1180 = shalt.err (!%p1177_p7)
}
 0x15f   :  { %s1185_s11 = smov 128   ;;  %s1186_s12 = smov 8  }
 0x160   :  { %781 = dma.vmem_to_hbm [thread:$0]  %s776_s29, 2048, %s1705_s3, [#allocation3], %s1185_s11, %s1185_s11, %s1186_s12  }
 0x1e2   :  { %v1030_v55 = vpop.f32.mrb[0].mxu1  ;;  %v991_v56 = vpop.f32.mrb[16].mxu0 }
 0x1e3   :  { %733 = vst [vmem:[%s1706_s4 + $0xd8] sm:$0xff] %v1030_v55  ;;  %v517_v57 = vpop.f32.mrb[1].mxu1  ;;  %707 = vst [vmem:[%s1706_s4 + $0x8] sm:$0xff] %v991_v56  ;;  %v387_v58 = vpop.f32.mrb[17].mxu0 }
 0x1e4   :  { %732 = vst [vmem:[%s1706_s4 + $0xd0] sm:$0xff] %v517_v57  ;;  %706 = vst [vmem:[%s1706_s4] sm:$0xff] %v387_v58 }
 0x1e6   :  { %v1033_v59 = vpop.f32.mrb[2].mxu1  ;;  %v994_v60 = vpop.f32.mrb[18].mxu0 }
 0x1e7   :  { %735 = vst [vmem:[%s1706_s4 + $0xe8] sm:$0xff] %v1033_v59  ;;  %v527_v61 = vpop.f32.mrb[3].mxu1  ;;  %709 = vst [vmem:[%s1706_s4 + $0x18] sm:$0xff] %v994_v60  ;;  %v397_v62 = vpop.f32.mrb[19].mxu0 }
 0x1e8   :  { %734 = vst [vmem:[%s1706_s4 + $0xe0] sm:$0xff] %v527_v61  ;;  %708 = vst [vmem:[%s1706_s4 + $0x10] sm:$0xff] %v397_v62 }
 0x1ea   :  { %v1036_v63 = vpop.f32.mrb[4].mxu1  ;;  %v997_v0 = vpop.f32.mrb[20].mxu0 }
 0x1eb   :  { %737 = vst [vmem:[%s1706_s4 + $0xf8] sm:$0xff] %v1036_v63  ;;  %v537_v1 = vpop.f32.mrb[5].mxu1  ;;  %711 = vst [vmem:[%s1706_s4 + $0x28] sm:$0xff] %v997_v0  ;;  %v407_v2 = vpop.f32.mrb[21].mxu0 }
 0x1ec   :  { %736 = vst [vmem:[%s1706_s4 + $0xf0] sm:$0xff] %v537_v1  ;;  %710 = vst [vmem:[%s1706_s4 + $0x20] sm:$0xff] %v407_v2 }
 0x1ee   :  { %v1039_v3 = vpop.f32.mrb[6].mxu1  ;;  %v1000_v4 = vpop.f32.mrb[22].mxu0 }
 0x1ef   :  { %739 = vst [vmem:[%s1706_s4 + $0x108] sm:$0xff] %v1039_v3  ;;  %v547_v5 = vpop.f32.mrb[7].mxu1  ;;  %713 = vst [vmem:[%s1706_s4 + $0x38] sm:$0xff] %v1000_v4  ;;  %v417_v6 = vpop.f32.mrb[23].mxu0 }
 0x1f0   :  { %738 = vst [vmem:[%s1706_s4 + $0x100] sm:$0xff] %v547_v5  ;;  %712 = vst [vmem:[%s1706_s4 + $0x30] sm:$0xff] %v417_v6 }
 0x1f2   :  { %v1042_v7 = vpop.f32.mrb[8].mxu1  ;;  %v1003_v8 = vpop.f32.mrb[24].mxu0 }
 0x1f3   :  { %741 = vst [vmem:[%s1706_s4 + $0x118] sm:$0xff] %v1042_v7  ;;  %v557_v9 = vpop.f32.mrb[9].mxu1  ;;  %715 = vst [vmem:[%s1706_s4 + $0x48] sm:$0xff] %v1003_v8  ;;  %v427_v10 = vpop.f32.mrb[25].mxu0 }
 0x1f4   :  { %740 = vst [vmem:[%s1706_s4 + $0x110] sm:$0xff] %v557_v9  ;;  %714 = vst [vmem:[%s1706_s4 + $0x40] sm:$0xff] %v427_v10 }
 0x1f6   :  { %v1045_v11 = vpop.f32.mrb[10].mxu1  ;;  %v1006_v12 = vpop.f32.mrb[26].mxu0 }
 0x1f7   :  { %743 = vst [vmem:[%s1706_s4 + $0x128] sm:$0xff] %v1045_v11  ;;  %v567_v13 = vpop.f32.mrb[11].mxu1  ;;  %717 = vst [vmem:[%s1706_s4 + $0x58] sm:$0xff] %v1006_v12  ;;  %v437_v14 = vpop.f32.mrb[27].mxu0 }
 0x1f8   :  { %742 = vst [vmem:[%s1706_s4 + $0x120] sm:$0xff] %v567_v13  ;;  %716 = vst [vmem:[%s1706_s4 + $0x50] sm:$0xff] %v437_v14 }
 0x1fa   :  { %v1048_v15 = vpop.f32.mrb[12].mxu1  ;;  %v1009_v16 = vpop.f32.mrb[28].mxu0 }
 0x1fb   :  { %745 = vst [vmem:[%s1706_s4 + $0x138] sm:$0xff] %v1048_v15  ;;  %v577_v17 = vpop.f32.mrb[13].mxu1  ;;  %719 = vst [vmem:[%s1706_s4 + $0x68] sm:$0xff] %v1009_v16  ;;  %v447_v18 = vpop.f32.mrb[29].mxu0 }
 0x1fc   :  { %744 = vst [vmem:[%s1706_s4 + $0x130] sm:$0xff] %v577_v17  ;;  %718 = vst [vmem:[%s1706_s4 + $0x60] sm:$0xff] %v447_v18 }
 0x1fe   :  { %v1051_v19 = vpop.f32.mrb[14].mxu1  ;;  %v1012_v20 = vpop.f32.mrb[30].mxu0 }
 0x1ff   :  { %747 = vst [vmem:[%s1706_s4 + $0x148] sm:$0xff] %v1051_v19  ;;  %v587_v21 = vpop.f32.mrb[15].mxu1  ;;  %721 = vst [vmem:[%s1706_s4 + $0x78] sm:$0xff] %v1012_v20  ;;  %v457_v22 = vpop.f32.mrb[31].mxu0 }
 0x200   :  { %746 = vst [vmem:[%s1706_s4 + $0x140] sm:$0xff] %v587_v21  ;;  %720 = vst [vmem:[%s1706_s4 + $0x70] sm:$0xff] %v457_v22 }
 0x202   :  { %v1054_v23 = vpop.f32.mrb[16].mxu1  ;;  %v1015_v24 = vpop.f32.mrb[32].mxu0 }
 0x203   :  { %749 = vst [vmem:[%s1706_s4 + $0x158] sm:$0xff] %v1054_v23  ;;  %v597_v25 = vpop.f32.mrb[17].mxu1  ;;  %723 = vst [vmem:[%s1706_s4 + $0x88] sm:$0xff] %v1015_v24  ;;  %v467_v26 = vpop.f32.mrb[33].mxu0 }
 0x204   :  { %748 = vst [vmem:[%s1706_s4 + $0x150] sm:$0xff] %v597_v25  ;;  %722 = vst [vmem:[%s1706_s4 + $0x80] sm:$0xff] %v467_v26 }
 0x206   :  { %v1057_v27 = vpop.f32.mrb[18].mxu1  ;;  %v1018_v28 = vpop.f32.mrb[34].mxu0 }
 0x207   :  { %751 = vst [vmem:[%s1706_s4 + $0x168] sm:$0xff] %v1057_v27  ;;  %v607_v29 = vpop.f32.mrb[19].mxu1  ;;  %725 = vst [vmem:[%s1706_s4 + $0x98] sm:$0xff] %v1018_v28  ;;  %v477_v30 = vpop.f32.mrb[35].mxu0 }
 0x208   :  { %750 = vst [vmem:[%s1706_s4 + $0x160] sm:$0xff] %v607_v29  ;;  %724 = vst [vmem:[%s1706_s4 + $0x90] sm:$0xff] %v477_v30 }
 0x20a   :  { %v1060_v31 = vpop.f32.mrb[20].mxu1  ;;  %v1021_v32 = vpop.f32.mrb[36].mxu0 }
 0x20b   :  { %753 = vst [vmem:[%s1706_s4 + $0x178] sm:$0xff] %v1060_v31  ;;  %v617_v33 = vpop.f32.mrb[21].mxu1  ;;  %727 = vst [vmem:[%s1706_s4 + $0xa8] sm:$0xff] %v1021_v32  ;;  %v487_v34 = vpop.f32.mrb[37].mxu0 }
 0x20c   :  { %752 = vst [vmem:[%s1706_s4 + $0x170] sm:$0xff] %v617_v33  ;;  %726 = vst [vmem:[%s1706_s4 + $0xa0] sm:$0xff] %v487_v34 }
 0x20e   :  { %v1063_v35 = vpop.f32.mrb[22].mxu1  ;;  %v1024_v36 = vpop.f32.mrb[38].mxu0 }
 0x20f   :  { %755 = vst [vmem:[%s1706_s4 + $0x188] sm:$0xff] %v1063_v35  ;;  %v627_v37 = vpop.f32.mrb[23].mxu1  ;;  %729 = vst [vmem:[%s1706_s4 + $0xb8] sm:$0xff] %v1024_v36  ;;  %v497_v38 = vpop.f32.mrb[39].mxu0 }
 0x210   :  { %754 = vst [vmem:[%s1706_s4 + $0x180] sm:$0xff] %v627_v37  ;;  %728 = vst [vmem:[%s1706_s4 + $0xb0] sm:$0xff] %v497_v38 }
 0x212   :  { %v1066_v39 = vpop.f32.mrb[24].mxu1  ;;  %v1027_v40 = vpop.f32.mrb[40].mxu0 }
 0x213   :  { %757 = vst [vmem:[%s1706_s4 + $0x198] sm:$0xff] %v1066_v39  ;;  %v637_v41 = vpop.f32.mrb[25].mxu1  ;;  %731 = vst [vmem:[%s1706_s4 + $0xc8] sm:$0xff] %v1027_v40  ;;  %v507_v42 = vpop.f32.mrb[41].mxu0 }
 0x214   :  { %756 = vst [vmem:[%s1706_s4 + $0x190] sm:$0xff] %v637_v41  ;;  %730 = vst [vmem:[%s1706_s4 + $0xc0] sm:$0xff] %v507_v42 }
 0x216   :  { %v1069_v43 = vpop.f32.mrb[26].mxu1 }
 0x217   :  { %759 = vst [vmem:[%s1706_s4 + $0x1a8] sm:$0xff] %v1069_v43  ;;  %v647_v44 = vpop.f32.mrb[27].mxu1 }
 0x218   :  { %758 = vst [vmem:[%s1706_s4 + $0x1a0] sm:$0xff] %v647_v44 }
 0x21a   :  { %v1072_v45 = vpop.f32.mrb[28].mxu1 }
 0x21b   :  { %761 = vst [vmem:[%s1706_s4 + $0x1b8] sm:$0xff] %v1072_v45  ;;  %v657_v46 = vpop.f32.mrb[29].mxu1 }
 0x21c   :  { %760 = vst [vmem:[%s1706_s4 + $0x1b0] sm:$0xff] %v657_v46 }
 0x21e   :  { %v1075_v47 = vpop.f32.mrb[30].mxu1 }
 0x21f   :  { %763 = vst [vmem:[%s1706_s4 + $0x1c8] sm:$0xff] %v1075_v47  ;;  %v667_v48 = vpop.f32.mrb[31].mxu1 }
 0x220   :  { %762 = vst [vmem:[%s1706_s4 + $0x1c0] sm:$0xff] %v667_v48 }
 0x222   :  { %v1078_v49 = vpop.f32.mrb[32].mxu1 }
 0x223   :  { %765 = vst [vmem:[%s1706_s4 + $0x1d8] sm:$0xff] %v1078_v49  ;;  %v677_v50 = vpop.f32.mrb[33].mxu1 }
 0x224   :  { %764 = vst [vmem:[%s1706_s4 + $0x1d0] sm:$0xff] %v677_v50 }
 0x226   :  { %v1081_v51 = vpop.f32.mrb[34].mxu1 }
 0x227   :  { %767 = vst [vmem:[%s1706_s4 + $0x1e8] sm:$0xff] %v1081_v51  ;;  %v687_v52 = vpop.f32.mrb[35].mxu1 }
 0x228   :  { %766 = vst [vmem:[%s1706_s4 + $0x1e0] sm:$0xff] %v687_v52 }
 0x22a   :  { %v1084_v53 = vpop.f32.mrb[36].mxu1 }
 0x22b   :  { %769 = vst [vmem:[%s1706_s4 + $0x1f8] sm:$0xff] %v1084_v53  ;;  %v697_v54 = vpop.f32.mrb[37].mxu1 }
 0x22c   :  { %768 = vst [vmem:[%s1706_s4 + $0x1f0] sm:$0xff] %v697_v54 }
 0x22d   :  { %1181 = dma.done.wait [#allocation3], 2048  }
 0x22e   :  { %1182 = vsyncadd [#allocation3], 4294965248 }
 0x22f   :  { %789 = vsyncpa [#allocation3], 1 }

</bundles_post_ra>
